<compile_context>
chip_gen: v7x
topology: tpu7x:2x2x1
jax: 0.10.0
libtpu: 0.0.40
codegen_flags: <defaults>
</compile_context>

<pallas_src>
import jax
import jax.numpy as jnp
from jax import lax
from jax.experimental import pallas as pl
from jax.experimental.pallas import tpu as pltpu


# ----------------------------- in-kernel math -----------------------------

def _replicate_pad_time(x, p):
    """Replicate-pad a (T, N) slab by p rows at each end -> (T + 2p, N)."""
    T, N = x.shape
    top = jnp.broadcast_to(x[0:1, :], (p, N))
    bot = jnp.broadcast_to(x[T - 1:T, :], (p, N))
    return jnp.concatenate([top, x, bot], axis=0)


def _conv_same_replicate(x, w_ref, b_ref):
    """'same' Conv1d with replicate padding as ONE im2col MXU matmul.

    x: (T, N) f32 activations; w_ref: (K*N, M) bf16 weights with rows ordered
    (tap, input-col); b_ref: (1, M) f32 bias.  Returns (T, M) f32.
    """
    T, N = x.shape
    K = w_ref.shape[0] // N
    p = K // 2
    xpad = _replicate_pad_time(x, p)                       # one pad concat
    # im2col: K contiguous (T, N) views of the padded slab, lane-concatenated
    # into a single deep-contraction operand (no per-tap 1-row slab copies).
    xcol = jnp.concatenate([xpad[k:k + T, :] for k in range(K)], axis=1)
    out = jnp.dot(xcol.astype(jnp.bfloat16), w_ref[...],   # bf16 MXU operands
                  preferred_element_type=jnp.float32)      # f32 accumulation
    return out + b_ref[...]


def _fused_double_conv(x, w1_ref, b1_ref, w2_ref, b2_ref):
    """OneDim_DoubleConv on branch-fused columns:
    Conv1d(k=5) -> LeakyReLU(0.01) -> [Dropout=id] -> Conv1d(k=3) -> Tanh."""
    h = _conv_same_replicate(x, w1_ref, b1_ref)
    h = jnp.where(h > 0, h, 0.01 * h)          # LeakyReLU, default slope (f32 VPU)
    # TODO(synk): nn.Dropout(0.25) is stochastic in train mode; eval = identity.
    return jnp.tanh(_conv_same_replicate(h, w2_ref, b2_ref))


def _interactor_kernel(u_ref,
                       w1s1_ref, b1s1_ref, w2s1_ref, b2s1_ref,   # stage 1: psi|phi
                       w1s2_ref, b1s2_ref, w2s2_ref, b2s2_ref,   # stage 2: rho|yita
                       out_ref, y_scr):
    """One batch element per grid step.

    u_ref:   (1, H, 2C) f32, lanes = [odd0 | even0] (time already de-interleaved).
    out_ref: (1, H, 2C) f32, lanes = [out_even | out_odd] (lane-dense slab).
    y_scr:   (2H, C) f32 VMEM scratch used for the two time re-interleaves.
    """
    _, H, twoC = u_ref.shape
    C = twoC // 2

    u = u_ref[0]                                  # (H, 2C) = [odd0 | even0]
    odd0 = u[:, :C]
    even0 = u[:, C:]

    # ---- stage 1: a = even * exp(psi(odd));  b = odd * exp(phi(even)) ----
    g1 = _fused_double_conv(u, w1s1_ref, b1s1_ref, w2s1_ref, b2s1_ref)
    e1 = jnp.exp(g1)                              # f32 EUP
    a = even0 * e1[:, :C]                         # y[:H]
    b = odd0 * e1[:, C:]                          # y[H:]

    # y = concat_time(a, b); evens1 = y[::2], odds1 = y[1::2]
    # -> VMEM scratch + stride-2 sublane reads (no selection matmuls).
    y_scr[pl.ds(0, H), :] = a
    y_scr[pl.ds(H, H), :] = b
    evens1 = y_scr[pl.ds(0, H, stride=2), :]      # (H, C)
    odds1 = y_scr[pl.ds(1, H, stride=2), :]       # (H, C)

    # ---- stage 2: o1 = odds + rho(evens);  o2 = evens - yita(odds) ----
    v = jnp.concatenate([evens1, odds1], axis=1)  # lanes = [evens1 | odds1]
    g2 = _fused_double_conv(v, w1s2_ref, b1s2_ref, w2s2_ref, b2s2_ref)
    o1 = odds1 + g2[:, :C]
    o2 = evens1 - g2[:, C:]

    # z = concat_time(o1, o2); out_even = z[::2], out_odd = z[1::2]
    y_scr[pl.ds(0, H), :] = o1
    y_scr[pl.ds(H, H), :] = o2
    out_even = y_scr[pl.ds(0, H, stride=2), :]
    out_odd = y_scr[pl.ds(1, H, stride=2), :]

    out_ref[0] = jnp.concatenate([out_even, out_odd], axis=1)   # lane-dense store


# ------------------------- wrapper-side weight prep ------------------------

def _fuse_branch_weights(wA, bA, wB, bB):
    """Block-diagonal branch-fused conv weights (NO batch kron).

    wA, wB: PyTorch Conv1d weights (O, I, K); bA, bB: (O,).
    Returns w: (K * 2I, 2O) bf16 with rows ordered (tap, branch, c_in) and cols
    (branch, c_out), plus bias (1, 2O) f32.
    """
    O, I, K = wA.shape
    wa = jnp.transpose(wA, (2, 1, 0))     # (K, I, O)
    wb = jnp.transpose(wB, (2, 1, 0))
    z = jnp.zeros_like(wa)
    w = jnp.concatenate([jnp.concatenate([wa, z], axis=2),
                         jnp.concatenate([z, wb], axis=2)], axis=1)  # (K, 2I, 2O)
    w = w.reshape(K * 2 * I, 2 * O).astype(jnp.bfloat16)
    b = jnp.concatenate([bA, bB]).reshape(1, 2 * O).astype(jnp.float32)
    return w, b


def interactor_forward(x, psi, phi, rho, yita):
    """x: (B, C, L) NCL like PyTorch. psi/phi/rho/yita: (w1, b1, w2, b2) in
    PyTorch layout (w1: (hid, C, 5), w2: (C, hid, 3)).
    Returns (even, odd), each (B, C, L//2)."""
    B, C, L = x.shape
    assert L % 2 == 0, "sequence length must be even"
    H = L // 2
    hid = psi[0].shape[0]

    # Layout plumbing (wrapper-side, plain reshapes): time on sublanes, the two
    # conv-branch inputs concatenated on lanes -> (B, H, 2C) = [odd0 | even0].
    xt = jnp.transpose(x, (0, 2, 1)).reshape(B, H, 2, C)
    u0 = jnp.concatenate([xt[:, :, 1, :], xt[:, :, 0, :]], axis=-1)

    # Stage-1: branch A = psi (acts on odd), branch B = phi (acts on even).
    w1s1, b1s1 = _fuse_branch_weights(psi[0], psi[1], phi[0], phi[1])
    w2s1, b2s1 = _fuse_branch_weights(psi[2], psi[3], phi[2], phi[3])
    # Stage-2: branch A = rho (acts on evens), branch B = yita (acts on odds).
    w1s2, b1s2 = _fuse_branch_weights(rho[0], rho[1], yita[0], yita[1])
    w2s2, b2s2 = _fuse_branch_weights(rho[2], rho[3], yita[2], yita[3])

    # Weights/biases get constant index_maps -> fetched once, resident across
    # the batch grid; only the (1, H, 2C) activation tiles stream per step.
    def _full(shape):
        return pl.BlockSpec(shape, lambda b, _s=shape: (0,) * len(_s))

    flops = 2 * B * H * 2 * (5 * (2 * C) * (2 * hid) + 3 * (2 * hid) * (2 * C))
    cost = pl.CostEstimate(
        flops=flops,
        transcendentals=B * H * (2 * C) * 3,
        bytes_accessed=4 * (u0.size + B * H * 2 * C)
        + 2 * (w1s1.size + w2s1.size + w1s2.size + w2s2.size)
        + 4 * (b1s1.size + b2s1.size + b1s2.size + b2s2.size))

    out = pl.pallas_call(
        _interactor_kernel,
        out_shape=jax.ShapeDtypeStruct((B, H, 2 * C), jnp.float32),
        grid_spec=pltpu.PrefetchScalarGridSpec(
            num_scalar_prefetch=0,
            grid=(B,),
            in_specs=[
                pl.BlockSpec((1, H, 2 * C), lambda b: (b, 0, 0)),
                _full(w1s1.shape), _full(b1s1.shape),
                _full(w2s1.shape), _full(b2s1.shape),
                _full(w1s2.shape), _full(b1s2.shape),
                _full(w2s2.shape), _full(b2s2.shape),
            ],
            out_specs=pl.BlockSpec((1, H, 2 * C), lambda b: (b, 0, 0)),
            scratch_shapes=[pltpu.VMEM((L, C), jnp.float32)],
        ),
        compiler_params=pltpu.CompilerParams(
            dimension_semantics=("parallel",),        # megacore split on v7x
            vmem_limit_bytes=32 * 1024 * 1024),       # explicit, fits all gens
        cost_estimate=cost,
    )(u0, w1s1, b1s1, w2s1, b2s1, w1s2, b1s2, w2s2, b2s2)

    even = jnp.transpose(out[:, :, :C], (0, 2, 1))    # (B, C, H)
    odd = jnp.transpose(out[:, :, C:], (0, 2, 1))
    return even, odd


# ------------------------------ parameters --------------------------------

def init_double_conv_params(key, features, hidden):
    """PyTorch-layout params: conv1 (hid, C, 5)/(hid,), conv2 (C, hid, 3)/(C,)."""
    k1, k2, k3, k4 = jax.random.split(key, 4)
    w1 = 0.1 * jax.random.normal(k1, (hidden, features, 5), jnp.float32)
    b1 = 0.1 * jax.random.normal(k2, (hidden,), jnp.float32)
    w2 = 0.1 * jax.random.normal(k3, (features, hidden, 3), jnp.float32)
    b2 = 0.1 * jax.random.normal(k4, (features,), jnp.float32)
    return w1, b1, w2, b2


# ------------------------- pure-JAX reference check ------------------------

def _ref_conv1d(x, w, b):
    # x: (B, C, T) NCL, w: (O, I, K) PyTorch layout, replicate 'same' padding.
    K = w.shape[-1]
    p = K // 2
    xpad = jnp.concatenate([jnp.repeat(x[:, :, :1], p, axis=2), x,
                            jnp.repeat(x[:, :, -1:], p, axis=2)], axis=2)
    out = lax.conv_general_dilated(xpad, w, (1,), 'VALID',
                                   dimension_numbers=('NCH', 'OIH', 'NCH'))
    return out + b[None, :, None]


def _ref_double_conv(x, params):
    w1, b1, w2, b2 = params
    h = _ref_conv1d(x, w1, b1)
    h = jnp.where(h > 0, h, 0.01 * h)
    return jnp.tanh(_ref_conv1d(h, w2, b2))


def _ref_interactor(x, psi, phi, rho, yita):
    even, odd = x[:, :, ::2], x[:, :, 1::2]
    y = jnp.concatenate([even, odd], axis=2) * jnp.concatenate(
        [jnp.exp(_ref_double_conv(odd, psi)),
         jnp.exp(_ref_double_conv(even, phi))], axis=2)
    evens, odds = y[:, :, ::2], y[:, :, 1::2]
    z = jnp.concatenate([odds, evens], axis=2) + jnp.concatenate(
        [_ref_double_conv(evens, rho), -_ref_double_conv(odds, yita)], axis=2)
    return z[:, :, ::2], z[:, :, 1::2]


# ---------------------------------- main -----------------------------------

if __name__ == "__main__":
    B, C, L = 2, 4, 16           # batch, features, sequence length
    hidden = 2 * C               # hidden_size_rate = 2

    key = jax.random.PRNGKey(0)
    kx, kpsi, kphi, krho, kyita = jax.random.split(key, 5)

    x = jax.random.normal(kx, (B, C, L), jnp.float32)

    psi = init_double_conv_params(kpsi, C, hidden)
    phi = init_double_conv_params(kphi, C, hidden)
    rho = init_double_conv_params(krho, C, hidden)
    yita = init_double_conv_params(kyita, C, hidden)

    fwd = jax.jit(interactor_forward)
    even_out, odd_out = fwd(x, psi, phi, rho, yita)
    jax.block_until_ready(even_out)
    jax.block_until_ready(odd_out)

    ref_even, ref_odd = _ref_interactor(x, psi, phi, rho, yita)
    assert even_out.shape == (B, C, L // 2) and odd_out.shape == (B, C, L // 2)
    # bf16 MXU operands (f32 accumulation) vs the pure-f32 reference -> the
    # tolerance is loosened relative to an all-f32 kernel.
    assert jnp.allclose(even_out, ref_even, atol=2e-2, rtol=2e-2)
    assert jnp.allclose(odd_out, ref_odd, atol=2e-2, rtol=2e-2)

    print("KERNEL_OK")
</pallas_src>

<mosaic_0001>
module attributes {stable_mosaic.version = 11 : i64} {
  func.func @_interactor_kernel(%arg0: i32, %arg1: memref<1x8x8xf32, #tpu.memory_space<vmem>>, %arg2: memref<40x16xbf16, #tpu.memory_space<vmem>>, %arg3: memref<1x16xf32, #tpu.memory_space<vmem>>, %arg4: memref<48x8xbf16, #tpu.memory_space<vmem>>, %arg5: memref<1x8xf32, #tpu.memory_space<vmem>>, %arg6: memref<40x16xbf16, #tpu.memory_space<vmem>>, %arg7: memref<1x16xf32, #tpu.memory_space<vmem>>, %arg8: memref<48x8xbf16, #tpu.memory_space<vmem>>, %arg9: memref<1x8xf32, #tpu.memory_space<vmem>>, %arg10: memref<1x8x8xf32, #tpu.memory_space<vmem>>, %arg11: memref<16x4xf32, #tpu.memory_space<vmem>>) attributes {dimension_semantics = [#tpu.dimension_semantics<parallel>], iteration_bounds = array<i64: 2>, scalar_prefetch = 0 : i64, scratch_operands = 1 : i64, tpu.core_type = #tpu.core_type<tc>, window_params = [{transform_indices = @transform_0, window_bounds = array<i64: 1, 8, 8>}, {pipeline_mode = #tpu.pipeline_mode<synchronous>, transform_indices = @transform_1, window_bounds = array<i64: 40, 16>}, {pipeline_mode = #tpu.pipeline_mode<synchronous>, transform_indices = @transform_2, window_bounds = array<i64: 1, 16>}, {pipeline_mode = #tpu.pipeline_mode<synchronous>, transform_indices = @transform_3, window_bounds = array<i64: 48, 8>}, {pipeline_mode = #tpu.pipeline_mode<synchronous>, transform_indices = @transform_4, window_bounds = array<i64: 1, 8>}, {pipeline_mode = #tpu.pipeline_mode<synchronous>, transform_indices = @transform_5, window_bounds = array<i64: 40, 16>}, {pipeline_mode = #tpu.pipeline_mode<synchronous>, transform_indices = @transform_6, window_bounds = array<i64: 1, 16>}, {pipeline_mode = #tpu.pipeline_mode<synchronous>, transform_indices = @transform_7, window_bounds = array<i64: 48, 8>}, {pipeline_mode = #tpu.pipeline_mode<synchronous>, transform_indices = @transform_8, window_bounds = array<i64: 1, 8>}, {transform_indices = @transform_9, window_bounds = array<i64: 1, 8, 8>}]} {
    %c0 = arith.constant 0 : index
    %c0_0 = arith.constant 0 : index
    %c0_1 = arith.constant 0 : index
    %0 = vector.load %arg1[%c0, %c0_0, %c0_1] : memref<1x8x8xf32, #tpu.memory_space<vmem>>, vector<1x8x8xf32>
    %1 = vector.shape_cast %0 : vector<1x8x8xf32> to vector<8x8xf32>
    %2 = vector.extract_strided_slice %1 {offsets = [0, 0], sizes = [8, 4], strides = [1, 1]} : vector<8x8xf32> to vector<8x4xf32>
    %3 = vector.extract_strided_slice %1 {offsets = [0, 4], sizes = [8, 4], strides = [1, 1]} : vector<8x8xf32> to vector<8x4xf32>
    %4 = vector.extract_strided_slice %1 {offsets = [0, 0], sizes = [1, 8], strides = [1, 1]} : vector<8x8xf32> to vector<1x8xf32>
    %5 = vector.shape_cast %4 : vector<1x8xf32> to vector<1x8xf32>
    %6 = vector.broadcast %5 : vector<1x8xf32> to vector<2x8xf32>
    %7 = vector.extract_strided_slice %1 {offsets = [7, 0], sizes = [1, 8], strides = [1, 1]} : vector<8x8xf32> to vector<1x8xf32>
    %8 = vector.shape_cast %7 : vector<1x8xf32> to vector<1x8xf32>
    %9 = vector.broadcast %8 : vector<1x8xf32> to vector<2x8xf32>
    %10 = tpu.concatenate %6, %1, %9 in 0 : vector<2x8xf32>, vector<8x8xf32>, vector<2x8xf32> -> vector<12x8xf32>
    %11 = vector.extract_strided_slice %10 {offsets = [0, 0], sizes = [8, 8], strides = [1, 1]} : vector<12x8xf32> to vector<8x8xf32>
    %12 = vector.extract_strided_slice %10 {offsets = [1, 0], sizes = [8, 8], strides = [1, 1]} : vector<12x8xf32> to vector<8x8xf32>
    %13 = vector.extract_strided_slice %10 {offsets = [2, 0], sizes = [8, 8], strides = [1, 1]} : vector<12x8xf32> to vector<8x8xf32>
    %14 = vector.extract_strided_slice %10 {offsets = [3, 0], sizes = [8, 8], strides = [1, 1]} : vector<12x8xf32> to vector<8x8xf32>
    %15 = vector.extract_strided_slice %10 {offsets = [4, 0], sizes = [8, 8], strides = [1, 1]} : vector<12x8xf32> to vector<8x8xf32>
    %16 = tpu.concatenate %11, %12, %13, %14, %15 in 1 : vector<8x8xf32>, vector<8x8xf32>, vector<8x8xf32>, vector<8x8xf32>, vector<8x8xf32> -> vector<8x40xf32>
    %17 = arith.truncf %16 : vector<8x40xf32> to vector<8x40xbf16>
    %c0_2 = arith.constant 0 : index
    %c0_3 = arith.constant 0 : index
    %18 = vector.load %arg2[%c0_2, %c0_3] : memref<40x16xbf16, #tpu.memory_space<vmem>>, vector<40x16xbf16>
    %cst = arith.constant dense<0.000000e+00> : vector<8x16xf32>
    %19 = tpu.matmul %17, %18, %cst {dimension_numbers = #tpu.dot_dimension_numbers<[1], [0], [0], [1], [0, 0, 1, 1], [], []>} : vector<8x40xbf16>, vector<40x16xbf16>, vector<8x16xf32> -> vector<8x16xf32>
    %c0_4 = arith.constant 0 : index
    %c0_5 = arith.constant 0 : index
    %20 = vector.load %arg3[%c0_4, %c0_5] : memref<1x16xf32, #tpu.memory_space<vmem>>, vector<1x16xf32>
    %21 = vector.broadcast %20 : vector<1x16xf32> to vector<8x16xf32>
    %22 = arith.addf %19, %21 : vector<8x16xf32>
    %cst_6 = arith.constant 0.000000e+00 : f32
    %23 = vector.broadcast %cst_6 : f32 to vector<8x16xf32>
    %24 = arith.cmpf ogt, %22, %23 : vector<8x16xf32>
    %cst_7 = arith.constant 0.00999999977 : f32
    %25 = vector.broadcast %cst_7 : f32 to vector<8x16xf32>
    %26 = arith.mulf %25, %22 : vector<8x16xf32>
    %27 = arith.select %24, %22, %26 : vector<8x16xi1>, vector<8x16xf32>
    %28 = vector.extract_strided_slice %27 {offsets = [0, 0], sizes = [1, 16], strides = [1, 1]} : vector<8x16xf32> to vector<1x16xf32>
    %29 = vector.extract_strided_slice %27 {offsets = [7, 0], sizes = [1, 16], strides = [1, 1]} : vector<8x16xf32> to vector<1x16xf32>
    %30 = tpu.concatenate %28, %27, %29 in 0 : vector<1x16xf32>, vector<8x16xf32>, vector<1x16xf32> -> vector<10x16xf32>
    %31 = vector.extract_strided_slice %30 {offsets = [0, 0], sizes = [8, 16], strides = [1, 1]} : vector<10x16xf32> to vector<8x16xf32>
    %32 = vector.extract_strided_slice %30 {offsets = [1, 0], sizes = [8, 16], strides = [1, 1]} : vector<10x16xf32> to vector<8x16xf32>
    %33 = vector.extract_strided_slice %30 {offsets = [2, 0], sizes = [8, 16], strides = [1, 1]} : vector<10x16xf32> to vector<8x16xf32>
    %34 = tpu.concatenate %31, %32, %33 in 1 : vector<8x16xf32>, vector<8x16xf32>, vector<8x16xf32> -> vector<8x48xf32>
    %35 = arith.truncf %34 : vector<8x48xf32> to vector<8x48xbf16>
    %c0_8 = arith.constant 0 : index
    %c0_9 = arith.constant 0 : index
    %36 = vector.load %arg4[%c0_8, %c0_9] : memref<48x8xbf16, #tpu.memory_space<vmem>>, vector<48x8xbf16>
    %cst_10 = arith.constant dense<0.000000e+00> : vector<8x8xf32>
    %37 = tpu.matmul %35, %36, %cst_10 {dimension_numbers = #tpu.dot_dimension_numbers<[1], [0], [0], [1], [0, 0, 1, 1], [], []>} : vector<8x48xbf16>, vector<48x8xbf16>, vector<8x8xf32> -> vector<8x8xf32>
    %c0_11 = arith.constant 0 : index
    %c0_12 = arith.constant 0 : index
    %38 = vector.load %arg5[%c0_11, %c0_12] : memref<1x8xf32, #tpu.memory_space<vmem>>, vector<1x8xf32>
    %39 = vector.broadcast %38 : vector<1x8xf32> to vector<8x8xf32>
    %40 = arith.addf %37, %39 : vector<8x8xf32>
    %41 = math.tanh %40 : vector<8x8xf32>
    %42 = math.exp %41 : vector<8x8xf32>
    %43 = vector.extract_strided_slice %42 {offsets = [0, 0], sizes = [8, 4], strides = [1, 1]} : vector<8x8xf32> to vector<8x4xf32>
    %44 = arith.mulf %3, %43 : vector<8x4xf32>
    %45 = vector.extract_strided_slice %42 {offsets = [0, 4], sizes = [8, 4], strides = [1, 1]} : vector<8x8xf32> to vector<8x4xf32>
    %46 = arith.mulf %2, %45 : vector<8x4xf32>
    %c0_13 = arith.constant 0 : index
    %c0_14 = arith.constant 0 : index
    %47 = vector.load %arg11[%c0_13, %c0_14] : memref<16x4xf32, #tpu.memory_space<vmem>>, vector<8x4xf32>
    tpu.vector_store %arg11[%c0_13, %c0_14], %44 {strides = array<i32>} : memref<16x4xf32, #tpu.memory_space<vmem>>, vector<8x4xf32>,
    %c8 = arith.constant 8 : index
    %c0_15 = arith.constant 0 : index
    %48 = vector.load %arg11[%c8, %c0_15] : memref<16x4xf32, #tpu.memory_space<vmem>>, vector<8x4xf32>
    tpu.vector_store %arg11[%c8, %c0_15], %46 {strides = array<i32>} : memref<16x4xf32, #tpu.memory_space<vmem>>, vector<8x4xf32>,
    %c0_16 = arith.constant 0 : index
    %c0_17 = arith.constant 0 : index
    %49 = tpu.strided_load %arg11[%c0_16, %c0_17] {strides = array<i32: 2, 1>} : memref<16x4xf32, #tpu.memory_space<vmem>>, vector<8x4xf32>
    %c1 = arith.constant 1 : index
    %c0_18 = arith.constant 0 : index
    %50 = tpu.strided_load %arg11[%c1, %c0_18] {strides = array<i32: 2, 1>} : memref<16x4xf32, #tpu.memory_space<vmem>>, vector<8x4xf32>
    %51 = tpu.concatenate %49, %50 in 1 : vector<8x4xf32>, vector<8x4xf32> -> vector<8x8xf32>
    %52 = vector.extract_strided_slice %51 {offsets = [0, 0], sizes = [1, 8], strides = [1, 1]} : vector<8x8xf32> to vector<1x8xf32>
    %53 = vector.shape_cast %52 : vector<1x8xf32> to vector<1x8xf32>
    %54 = vector.broadcast %53 : vector<1x8xf32> to vector<2x8xf32>
    %55 = vector.extract_strided_slice %51 {offsets = [7, 0], sizes = [1, 8], strides = [1, 1]} : vector<8x8xf32> to vector<1x8xf32>
    %56 = vector.shape_cast %55 : vector<1x8xf32> to vector<1x8xf32>
    %57 = vector.broadcast %56 : vector<1x8xf32> to vector<2x8xf32>
    %58 = tpu.concatenate %54, %51, %57 in 0 : vector<2x8xf32>, vector<8x8xf32>, vector<2x8xf32> -> vector<12x8xf32>
    %59 = vector.extract_strided_slice %58 {offsets = [0, 0], sizes = [8, 8], strides = [1, 1]} : vector<12x8xf32> to vector<8x8xf32>
    %60 = vector.extract_strided_slice %58 {offsets = [1, 0], sizes = [8, 8], strides = [1, 1]} : vector<12x8xf32> to vector<8x8xf32>
    %61 = vector.extract_strided_slice %58 {offsets = [2, 0], sizes = [8, 8], strides = [1, 1]} : vector<12x8xf32> to vector<8x8xf32>
    %62 = vector.extract_strided_slice %58 {offsets = [3, 0], sizes = [8, 8], strides = [1, 1]} : vector<12x8xf32> to vector<8x8xf32>
    %63 = vector.extract_strided_slice %58 {offsets = [4, 0], sizes = [8, 8], strides = [1, 1]} : vector<12x8xf32> to vector<8x8xf32>
    %64 = tpu.concatenate %59, %60, %61, %62, %63 in 1 : vector<8x8xf32>, vector<8x8xf32>, vector<8x8xf32>, vector<8x8xf32>, vector<8x8xf32> -> vector<8x40xf32>
    %65 = arith.truncf %64 : vector<8x40xf32> to vector<8x40xbf16>
    %c0_19 = arith.constant 0 : index
    %c0_20 = arith.constant 0 : index
    %66 = vector.load %arg6[%c0_19, %c0_20] : memref<40x16xbf16, #tpu.memory_space<vmem>>, vector<40x16xbf16>
    %cst_21 = arith.constant dense<0.000000e+00> : vector<8x16xf32>
    %67 = tpu.matmul %65, %66, %cst_21 {dimension_numbers = #tpu.dot_dimension_numbers<[1], [0], [0], [1], [0, 0, 1, 1], [], []>} : vector<8x40xbf16>, vector<40x16xbf16>, vector<8x16xf32> -> vector<8x16xf32>
    %c0_22 = arith.constant 0 : index
    %c0_23 = arith.constant 0 : index
    %68 = vector.load %arg7[%c0_22, %c0_23] : memref<1x16xf32, #tpu.memory_space<vmem>>, vector<1x16xf32>
    %69 = vector.broadcast %68 : vector<1x16xf32> to vector<8x16xf32>
    %70 = arith.addf %67, %69 : vector<8x16xf32>
    %cst_24 = arith.constant 0.000000e+00 : f32
    %71 = vector.broadcast %cst_24 : f32 to vector<8x16xf32>
    %72 = arith.cmpf ogt, %70, %71 : vector<8x16xf32>
    %cst_25 = arith.constant 0.00999999977 : f32
    %73 = vector.broadcast %cst_25 : f32 to vector<8x16xf32>
    %74 = arith.mulf %73, %70 : vector<8x16xf32>
    %75 = arith.select %72, %70, %74 : vector<8x16xi1>, vector<8x16xf32>
    %76 = vector.extract_strided_slice %75 {offsets = [0, 0], sizes = [1, 16], strides = [1, 1]} : vector<8x16xf32> to vector<1x16xf32>
    %77 = vector.extract_strided_slice %75 {offsets = [7, 0], sizes = [1, 16], strides = [1, 1]} : vector<8x16xf32> to vector<1x16xf32>
    %78 = tpu.concatenate %76, %75, %77 in 0 : vector<1x16xf32>, vector<8x16xf32>, vector<1x16xf32> -> vector<10x16xf32>
    %79 = vector.extract_strided_slice %78 {offsets = [0, 0], sizes = [8, 16], strides = [1, 1]} : vector<10x16xf32> to vector<8x16xf32>
    %80 = vector.extract_strided_slice %78 {offsets = [1, 0], sizes = [8, 16], strides = [1, 1]} : vector<10x16xf32> to vector<8x16xf32>
    %81 = vector.extract_strided_slice %78 {offsets = [2, 0], sizes = [8, 16], strides = [1, 1]} : vector<10x16xf32> to vector<8x16xf32>
    %82 = tpu.concatenate %79, %80, %81 in 1 : vector<8x16xf32>, vector<8x16xf32>, vector<8x16xf32> -> vector<8x48xf32>
    %83 = arith.truncf %82 : vector<8x48xf32> to vector<8x48xbf16>
    %c0_26 = arith.constant 0 : index
    %c0_27 = arith.constant 0 : index
    %84 = vector.load %arg8[%c0_26, %c0_27] : memref<48x8xbf16, #tpu.memory_space<vmem>>, vector<48x8xbf16>
    %cst_28 = arith.constant dense<0.000000e+00> : vector<8x8xf32>
    %85 = tpu.matmul %83, %84, %cst_28 {dimension_numbers = #tpu.dot_dimension_numbers<[1], [0], [0], [1], [0, 0, 1, 1], [], []>} : vector<8x48xbf16>, vector<48x8xbf16>, vector<8x8xf32> -> vector<8x8xf32>
    %c0_29 = arith.constant 0 : index
    %c0_30 = arith.constant 0 : index
    %86 = vector.load %arg9[%c0_29, %c0_30] : memref<1x8xf32, #tpu.memory_space<vmem>>, vector<1x8xf32>
    %87 = vector.broadcast %86 : vector<1x8xf32> to vector<8x8xf32>
    %88 = arith.addf %85, %87 : vector<8x8xf32>
    %89 = math.tanh %88 : vector<8x8xf32>
    %90 = vector.extract_strided_slice %89 {offsets = [0, 0], sizes = [8, 4], strides = [1, 1]} : vector<8x8xf32> to vector<8x4xf32>
    %91 = arith.addf %50, %90 : vector<8x4xf32>
    %92 = vector.extract_strided_slice %89 {offsets = [0, 4], sizes = [8, 4], strides = [1, 1]} : vector<8x8xf32> to vector<8x4xf32>
    %93 = arith.subf %49, %92 : vector<8x4xf32>
    %c0_31 = arith.constant 0 : index
    %c0_32 = arith.constant 0 : index
    %94 = vector.load %arg11[%c0_31, %c0_32] : memref<16x4xf32, #tpu.memory_space<vmem>>, vector<8x4xf32>
    tpu.vector_store %arg11[%c0_31, %c0_32], %91 {strides = array<i32>} : memref<16x4xf32, #tpu.memory_space<vmem>>, vector<8x4xf32>,
    %c8_33 = arith.constant 8 : index
    %c0_34 = arith.constant 0 : index
    %95 = vector.load %arg11[%c8_33, %c0_34] : memref<16x4xf32, #tpu.memory_space<vmem>>, vector<8x4xf32>
    tpu.vector_store %arg11[%c8_33, %c0_34], %93 {strides = array<i32>} : memref<16x4xf32, #tpu.memory_space<vmem>>, vector<8x4xf32>,
    %c0_35 = arith.constant 0 : index
    %c0_36 = arith.constant 0 : index
    %96 = tpu.strided_load %arg11[%c0_35, %c0_36] {strides = array<i32: 2, 1>} : memref<16x4xf32, #tpu.memory_space<vmem>>, vector<8x4xf32>
    %c1_37 = arith.constant 1 : index
    %c0_38 = arith.constant 0 : index
    %97 = tpu.strided_load %arg11[%c1_37, %c0_38] {strides = array<i32: 2, 1>} : memref<16x4xf32, #tpu.memory_space<vmem>>, vector<8x4xf32>
    %98 = tpu.concatenate %96, %97 in 1 : vector<8x4xf32>, vector<8x4xf32> -> vector<8x8xf32>
    %c0_39 = arith.constant 0 : index
    %c0_40 = arith.constant 0 : index
    %c0_41 = arith.constant 0 : index
    %99 = vector.load %arg10[%c0_39, %c0_40, %c0_41] : memref<1x8x8xf32, #tpu.memory_space<vmem>>, vector<1x8x8xf32>
    %100 = vector.shape_cast %99 : vector<1x8x8xf32> to vector<8x8xf32>
    %101 = vector.shape_cast %98 : vector<8x8xf32> to vector<1x8x8xf32>
    tpu.vector_store %arg10[%c0_39, %c0_40, %c0_41], %101 {strides = array<i32>} : memref<1x8x8xf32, #tpu.memory_space<vmem>>, vector<1x8x8xf32>,
    return
  }
  func.func @transform_0(%arg0: i32) -> (i32, i32, i32) {
    %c0_i32 = arith.constant 0 : i32
    %c0_i32_0 = arith.constant 0 : i32
    %c0_i32_1 = arith.constant 0 : i32
    return %arg0, %c0_i32, %c0_i32_0 : i32, i32, i32
  }
  func.func @transform_1(%arg0: i32) -> (i32, i32) {
    %c0_i32 = arith.constant 0 : i32
    %c0_i32_0 = arith.constant 0 : i32
    %c0_i32_1 = arith.constant 0 : i32
    return %c0_i32, %c0_i32_0 : i32, i32
  }
  func.func @transform_2(%arg0: i32) -> (i32, i32) {
    %c0_i32 = arith.constant 0 : i32
    %c0_i32_0 = arith.constant 0 : i32
    %c0_i32_1 = arith.constant 0 : i32
    return %c0_i32, %c0_i32_0 : i32, i32
  }
  func.func @transform_3(%arg0: i32) -> (i32, i32) {
    %c0_i32 = arith.constant 0 : i32
    %c0_i32_0 = arith.constant 0 : i32
    %c0_i32_1 = arith.constant 0 : i32
    return %c0_i32, %c0_i32_0 : i32, i32
  }
  func.func @transform_4(%arg0: i32) -> (i32, i32) {
    %c0_i32 = arith.constant 0 : i32
    %c0_i32_0 = arith.constant 0 : i32
    %c0_i32_1 = arith.constant 0 : i32
    return %c0_i32, %c0_i32_0 : i32, i32
  }
  func.func @transform_5(%arg0: i32) -> (i32, i32) {
    %c0_i32 = arith.constant 0 : i32
    %c0_i32_0 = arith.constant 0 : i32
    %c0_i32_1 = arith.constant 0 : i32
    return %c0_i32, %c0_i32_0 : i32, i32
  }
  func.func @transform_6(%arg0: i32) -> (i32, i32) {
    %c0_i32 = arith.constant 0 : i32
    %c0_i32_0 = arith.constant 0 : i32
    %c0_i32_1 = arith.constant 0 : i32
    return %c0_i32, %c0_i32_0 : i32, i32
  }
  func.func @transform_7(%arg0: i32) -> (i32, i32) {
    %c0_i32 = arith.constant 0 : i32
    %c0_i32_0 = arith.constant 0 : i32
    %c0_i32_1 = arith.constant 0 : i32
    return %c0_i32, %c0_i32_0 : i32, i32
  }
  func.func @transform_8(%arg0: i32) -> (i32, i32) {
    %c0_i32 = arith.constant 0 : i32
    %c0_i32_0 = arith.constant 0 : i32
    %c0_i32_1 = arith.constant 0 : i32
    return %c0_i32, %c0_i32_0 : i32, i32
  }
  func.func @transform_9(%arg0: i32) -> (i32, i32, i32) {
    %c0_i32 = arith.constant 0 : i32
    %c0_i32_0 = arith.constant 0 : i32
    %c0_i32_1 = arith.constant 0 : i32
    return %arg0, %c0_i32, %c0_i32_0 : i32, i32, i32
  }
}

</mosaic_0001>

<bundles_post_ra>
// kernel: interactor_forward.1
= control target key start
LH: loop header
LB: loop body
LE: loop exit
PB: predicated region body
PF: predicated region fallthrough
CT: control target
= control target key end

     0   :  { %s1060_s30 = smov 0   ;;  %s1242_s0 = inlined_call_operand.vmem [shape: f32[2,8,8], index: 0, kind: input, shape index: {}]   ;;  %s1243_s1 = inlined_call_operand.vmem [shape: bf16[40,16], index: 1, kind: input, shape index: {}]   ;;  %s1244_s2 = inlined_call_operand.vmem [shape: f32[1,16], index: 2, kind: input, shape index: {}]   ;;  %s1245_s3 = inlined_call_operand.vmem [shape: bf16[48,8], index: 3, kind: input, shape index: {}]   ;;  %s1246_s4 = inlined_call_operand.vmem [shape: f32[1,8], index: 4, kind: input, shape index: {}]   ;;  %s1247_s5 = inlined_call_operand.vmem [shape: bf16[40,16], index: 5, kind: input, shape index: {}]   ;;  %s1248_s6 = inlined_call_operand.vmem [shape: f32[1,16], index: 6, kind: input, shape index: {}]   ;;  %s1249_s7 = inlined_call_operand.vmem [shape: bf16[48,8], index: 7, kind: input, shape index: {}]   ;;  %s1250_s8 = inlined_call_operand.vmem [shape: f32[1,8], index: 8, kind: input, shape index: {}]   ;;  %s1251_s9 = inlined_call_operand.vmem [shape: f32[2,8,8], index: 9, kind: output, shape index: {}]  }
   0x1 LB: > { %s875_s10 = sadd.s32 4294967295, %s1000_s30   ;;  %p879_p0 = scmp.ge.s32.totalorder %s1000_s30, 1  ;;  %s1000_s30 = sphi %s1060_s30, %s19_s30  }
   0x2   : > { %p286_p1 = scmp.lt.s32.totalorder %s1000_s30, 3 }
   0x4   : > { %p287_p2 = pnand %p879_p0, %p286_p1 }
   0x5   : > { %p320_p3 = scmp.lt.s32.totalorder (!%p287_p2), %s875_s10, 1  ;;  %v330_v0 = vlaneseq (!%p287_p2)  ;;  %v976_v1 = vld [vmem:[%s1243_s1] sm:$0xff] (!%p287_p2)   ;;  %v1002_v3 = vmov (!%p287_p2), 0.0   ;;  %v977_v4 = vld [vmem:[%s1243_s1 + $0x8] sm:$0xff] (!%p287_p2)   ;;  %vm341_vm0 = vcmask (!%p287_p2), 1041408   ;;  %vm346_vm1 = vcmask (!%p287_p2), 1046528  }
   0x6   : > { %290 = sbr.rel (%p287_p2) target bundleno = 2021 (0x7e5), region = 56  ;;  %920 = vmatprep.subr.bf16.mxu0 (!%p287_p2), %v1002_v3  ;;  %930 = vmatprep.subr.bf16.mxu1 (!%p287_p2), %v1002_v3  ;;  %v978_v7 = vld [vmem:[%s1243_s1 + $0x10] ss:$0 sps:$4 sm:$0xff] (!%p287_p2)   ;;  %vm360_vm2 = vcmask (!%p287_p2), 1044480   ;;  %vm367_vm3 = vcmask (!%p287_p2), 1043456   ;;  %vm353_vm4 = vcmask (!%p287_p2), 1045504  }
   0x7   : > { %v1073_v2 = vshrl.u32 (!%p287_p2), %v330_v0, 7  ;;  %921 = vmatpush3.bf16.msra.mxu0 (!%p287_p2), %v976_v1  ;;  %v415_v12 = vsel (!%p287_p2), %vm367_vm3, %v978_v7, 0  ;;  %vm1003_vm5 = vmmov (!%p287_p2), 0   ;;  %s1004_s21 = smov (!%p287_p2), 8   ;;  %s1005_s22 = smov (!%p287_p2), 24   ;;  %vm374_vm6 = vcmask (!%p287_p2), 64512  }
   0x8   : > { %922 = vmatprep.subr.bf16.mxu0 (!%p287_p2), %v1002_v3  ;;  %926 = vmatprep.mubr.msk.bf16.mxu0 (!%p287_p2), %vm1003_vm5, %v1002_v3  ;;  %s1006_s23 = smov (!%p287_p2), 16   ;;  %s1007_s24 = smov (!%p287_p2), 32   ;;  %vm376_vm7 = vcmask (!%p287_p2), 130048   ;;  %vm378_vm8 = vcmask (!%p287_p2), 195584   ;;  %vm380_vm9 = vcmask (!%p287_p2), 261120   ;;  %vm410_vm10 = vcmask (!%p287_p2), 326656  }
   0x9   : > { %v332_v5 = vsub.s32 (!%p287_p2), 0, %v1073_v2  ;;  %v336_v6 = vsub.s32 (!%p287_p2), 7, %v1073_v2  ;;  %936 = vmatprep.mubr.msk.bf16.mxu1 (!%p287_p2), %vm1003_vm5, %v1002_v3  ;;  %v979_v36 = vld [vmem:[%s1245_s3] sm:$0xff] (!%p287_p2)   ;;  %v980_v37 = vld [vmem:[%s1245_s3 + $0x8] sm:$0xff] (!%p287_p2)   ;;  %v981_v39 = vld [vmem:[%s1245_s3 + $0x10] sm:$0xff] (!%p287_p2)   ;;  %vm465_vm12 = vcmask (!%p287_p2), 1040384  }
   0xa   : > { %931 = vmatpush3.bf16.msra.mxu1 (!%p287_p2), %v979_v36  ;;  %v882_v38 = vld [vmem:[%s1244_s2] ss:$0 sm:$0xff] (!%p287_p2)  ;;  %vm516_vm13 = vcmask (!%p287_p2), 392192   ;;  %s1008_s17 = smov (!%p287_p2), 124   ;;  %vm576_vm14 = vcmask (!%p287_p2), 31744  }
   0xb   : > { %923 = vmatpush3.bf16.msra.mxu0 (!%p287_p2), %v977_v4  ;;  %932 = vmatprep.subr.bf16.mxu1 (!%p287_p2), %v1002_v3  ;;  %v887_v62 = vld [vmem:[%s1246_s4] ss:$0 sm:$0xff] (!%p287_p2) }
   0xc   : > { %924 = vmatprep.subr.bf16.mxu0 (!%p287_p2), %v1002_v3 }
   0xd   : > { %s1253_s10 = smov (!%p320_p3, %s875_s10), 1 }
   0xe   : > { %s880_s15 = sshll.u32 %s1253_s10, 3  ;;  %933 = vmatpush3.bf16.msra.mxu1 %v980_v37 }
   0xf   : > { %s323_s18 = scalar_lea.vmem %s1242_s0, %s880_s15  ;;  %925 = vmatpush3.bf16.msra.mxu0 %v415_v12  ;;  %934 = vmatprep.subr.bf16.mxu1 %v1002_v3  ;;  %s327_s25 = scalar_lea.vmem %s1251_s9, %s880_s15 }
  0x10   : > { %v1092_v8 = vld [vmem:[%s323_s18] sm:$0xff]  ;;  %940 = vmatprep.subr.bf16.mxu0 %v1002_v3  ;;  %s1009_s18 = smov 4  }
  0x11   : > { %v333_v9 = vrot.slane %v1092_v8, %v332_v5  ;;  %v337_v10 = vrot.slane %v1092_v8, %v336_v6  ;;  %v339_v11 = vrot.slane %v1092_v8, 6 }
  0x12   : > { %935 = vmatpush3.bf16.msra.mxu1 %v981_v39 }
  0x13   : > { %v342_v13 = vsel %vm341_vm0, %v333_v9, %v339_v11  ;;  %v343_v14 = vsel %vm341_vm0, %v339_v11, %v337_v10  ;;  %950 = vmatprep.subr.bf16.mxu1 %v1002_v3 }
  0x14   : > { %v347_v15 = vrot.slane %v342_v13, 1  ;;  %v348_v16 = vrot.slane %v343_v14, 1  ;;  %v361_v17 = vrot.slane %v342_v13, 3  ;;  %v362_v18 = vrot.slane %v343_v14, 3 }
  0x15   : > { %v354_v19 = vrot.slane %v342_v13, 2  ;;  %v355_v20 = vrot.slane %v343_v14, 2  ;;  %v368_v21 = vrot.slane %v342_v13, 4  ;;  %v369_v22 = vrot.slane %v343_v14, 4 }
  0x16   : > { %v349_v23 = vsel %vm346_vm1, %v347_v15, %v348_v16  ;;  %v363_v24 = vsel %vm360_vm2, %v361_v17, %v362_v18  ;;  %v982_v17 = vld [vmem:[%s1247_s5] sm:$0xff]  }
  0x17   : > { %350 = vrot.lane.b32.xlu0 %v349_v23, %s1004_s21  ;;  %364 = vrot.lane.b32.xlu1 %v363_v24, %s1005_s22  ;;  %v356_v25 = vsel %vm353_vm4, %v354_v19, %v355_v20  ;;  %v370_v26 = vsel %vm367_vm3, %v368_v21, %v369_v22  ;;  %v984_v19 = vld [vmem:[%s1247_s5 + $0x10] ss:$0 sps:$4 sm:$0xff]  }
  0x18   : > { %v662_v22 = vsel %vm367_vm3, %v984_v19, 0 }
  0x1b   : > { %357 = vrot.lane.b32.xlu0 %v356_v25, %s1006_s23  ;;  %371 = vrot.lane.b32.xlu1 %v370_v26, %s1007_s24 }
  0x89   : > { %v351_v27 = vpop.permute.xlu0 %350  ;;  %v365_v28 = vpop.permute.xlu1 %364 }
  0x8a   : > { %v375_v29 = vsel %vm374_vm6, %v342_v13, %v351_v27 }
  0x8d   : > { %v358_v30 = vpop.permute.xlu0 %357  ;;  %v372_v31 = vpop.permute.xlu1 %371 }
  0x8e   : > { %v377_v32 = vsel %vm376_vm7, %v375_v29, %v358_v30 }
  0x8f   : > { %v379_v33 = vsel %vm378_vm8, %v377_v32, %v365_v28 }
  0x90   : > { %v381_v34 = vsel %vm380_vm9, %v379_v33, %v372_v31 }
  0x91   : > { %v382_v35 = vpack.c.bf16 %v381_v34, %v381_v34 }
  0x93   : > { %927 = vmatmul.mubr.msk.bf16.vlgmr.msra.gmra.mrb[0].mxu0 %vm410_vm10, %v382_v35 }
  0x94   : > { %946 = vmatprep.mubr.msk.bf16.mxu0 %vm1003_vm5, %v1002_v3  ;;  %941 = vmatpush3.bf16.msra.mxu0 %v982_v17 }
  0x95   : > { %942 = vmatprep.subr.bf16.mxu0 %v1002_v3 }
 0x166   : > { %v451_v40 = vpop.f32.mrb[0].mxu0 }
 0x167   : > { %v452_v41 = vadd.f32 %v882_v38, %v451_v40  ;;  %v928_v42 = vpop.f32.mrb[1].mxu0 }
 0x168   : > { %v454_v43 = vpop.f32.mrb[2].mxu0 }
 0x169   : > { %vm457_vm11 = vcmp.gt.f32.partialorder %v452_v41, 0.0  ;;  %v458_v44 = vmul.f32 0.01, %v452_v41  ;;  %v929_v45 = vpop.f32.mrb[3].mxu0 }
 0x16b   : > { %v459_v46 = vsel %vm457_vm11, %v452_v41, %v458_v44 }
 0x16c   : > { %v461_v47 = vrot.slane %v459_v46, 7  ;;  %v463_v48 = vrot.slane %v459_v46, 6 }
 0x16e   : > { %v466_v49 = vsel %vm465_vm12, %v459_v46, %v461_v47  ;;  %v467_v50 = vsel %vm465_vm12, %v461_v47, %v463_v48  ;;  %v985_v47 = vld [vmem:[%s1249_s7] sm:$0xff]   ;;  %v986_v48 = vld [vmem:[%s1249_s7 + $0x8] sm:$0xff]  }
 0x16f   : > { %v476_v51 = vrot.slane %v466_v49, 2  ;;  %v477_v52 = vrot.slane %v467_v50, 2  ;;  %v470_v53 = vrot.slane %v466_v49, 1  ;;  %v471_v54 = vrot.slane %v467_v50, 1  ;;  %v987_v50 = vld [vmem:[%s1249_s7 + $0x10] sm:$0xff]  }
 0x171   : > { %v478_v55 = vsel %vm353_vm4, %v476_v51, %v477_v52  ;;  %v472_v56 = vsel %vm346_vm1, %v470_v53, %v471_v54 }
 0x172   : > { %479 = vrot.lane.b32.xlu1 %v478_v55, %s1007_s24  ;;  %473 = vrot.lane.b32.xlu0 %v472_v56, %s1006_s23 }
 0x1e4   : > { %v480_v57 = vpop.permute.xlu1 %479  ;;  %v474_v58 = vpop.permute.xlu0 %473 }
 0x1e5   : > { %v482_v59 = vsel %vm376_vm7, %v466_v49, %v474_v58  ;;  %v892_v49 = vld [vmem:[%s1248_s6] ss:$0 sm:$0xff] }
 0x1e6   : > { %v483_v60 = vsel %vm380_vm9, %v482_v59, %v480_v57 }
 0x1e7   : > { %v484_v61 = vpack.c.bf16 %v483_v60, %v483_v60 }
 0x1e9   : > { %937 = vmatmul.mubr.msk.bf16.vlgmr.msra.gmra.mrb[0].mxu1 %vm516_vm13, %v484_v61 }
 0x1ea   : > { %956 = vmatprep.mubr.msk.bf16.mxu1 %vm1003_vm5, %v1002_v3  ;;  %951 = vmatpush3.bf16.msra.mxu1 %v985_v47 }
 0x1eb   : > { %952 = vmatprep.subr.bf16.mxu1 %v1002_v3 }
 0x1ee   : > { %953 = vmatpush3.bf16.msra.mxu1 %v986_v48 }
 0x1ef   : > { %954 = vmatprep.subr.bf16.mxu1 %v1002_v3 }
 0x1f2   : > { %955 = vmatpush3.bf16.msra.mxu1 %v987_v50 }
 0x2bc   : > { %v554_v63 = vpop.f32.mrb[0].mxu1 }
 0x2bd   : > { %v555_v0 = vadd.f32 %v887_v62, %v554_v63  ;;  %v938_v1 = vpop.f32.mrb[1].mxu1 }
 0x2be   : > { %v557_v4 = vpop.f32.mrb[2].mxu1 }
 0x2bf   : > { %988 = vtanh.f32 %v555_v0  ;;  %v939_v7 = vpop.f32.mrb[3].mxu1 }
 0x2c9   : > { %v989_v9 = vpop.eup %988 }
 0x2ca   : > { %v561_v10 = vmul.f32 1.442695, %v989_v9 }
 0x2cc   : > { %990 = vpow2.f32 %v561_v10 }
 0x2d6   : > { %v991_v11 = vpop.eup %990 }
 0x2d7   : > { %568 = vrot.lane.b32.xlu1 %v991_v11, %s1008_s17  ;;  %564 = vrot.lane.b32.xlu0 %v991_v11, %s1009_s18 }
 0x349   : > { %v569_v12 = vpop.permute.xlu1 %568  ;;  %v565_v13 = vpop.permute.xlu0 %564 }
 0x34a   : > { %v571_v14 = vmul.f32 %v569_v12, %v1092_v8  ;;  %v567_v15 = vmul.f32 %v565_v13, %v1092_v8  ;;  %v983_v8 = vld [vmem:[%s1247_s5 + $0x8] sm:$0xff]   ;;  %v897_v13 = vld [vmem:[%s1250_s8] ss:$0 sm:$0xff] }
 0x34b   : > { %943 = vmatpush3.bf16.msra.mxu0 %v983_v8 }
 0x34c   : > { %578 = vst.msk [vmem:[#allocation2 + $0x8] sm:$0xff] %vm576_vm14, %v571_v14  ;;  %573 = vrot.lane.b32.xlu0 %v567_v15, %s1008_s17  ;;  %944 = vmatprep.subr.bf16.mxu0 %v1002_v3 }
 0x34f   : > { %945 = vmatpush3.bf16.msra.mxu0 %v662_v22 }
 0x3be   : > { %v574_v16 = vpop.permute.xlu0 %573 }
 0x3bf   : > { %577 = vst.msk [vmem:[#allocation2] sm:$0xff] %vm576_vm14, %v574_v16 }
 0x3c6   : > { %v1164_v18 = vld [vmem:[#allocation2 + $0x1] ss:$2 sm:$0xff]  ;;  %v1176_v21 = vld [vmem:[#allocation2] ss:$2 sm:$0xff] }
 0x3c7   : > { %583 = vrot.lane.b32.xlu1 %v1164_v18, %s1009_s18 }
 0x439   : > { %v584_v20 = vpop.permute.xlu1 %583 }
 0x43a   : > { %v586_v23 = vsel %vm576_vm14, %v1176_v21, %v584_v20 }
 0x43b   : > { %v590_v24 = vrot.slane %v586_v23, %v332_v5  ;;  %v594_v25 = vrot.slane %v586_v23, %v336_v6  ;;  %v596_v26 = vrot.slane %v586_v23, 6 }
 0x43d   : > { %v598_v27 = vsel %vm341_vm0, %v590_v24, %v596_v26  ;;  %v599_v28 = vsel %vm341_vm0, %v596_v26, %v594_v25 }
 0x43e   : > { %v608_v29 = vrot.slane %v598_v27, 2  ;;  %v609_v30 = vrot.slane %v599_v28, 2  ;;  %v602_v31 = vrot.slane %v598_v27, 1  ;;  %v603_v32 = vrot.slane %v599_v28, 1 }
 0x43f   : > { %v620_v33 = vrot.slane %v598_v27, 4  ;;  %v621_v34 = vrot.slane %v599_v28, 4  ;;  %v614_v37 = vrot.slane %v598_v27, 3  ;;  %v615_v5 = vrot.slane %v599_v28, 3 }
 0x440   : > { %v610_v35 = vsel %vm353_vm4, %v608_v29, %v609_v30  ;;  %v604_v36 = vsel %vm346_vm1, %v602_v31, %v603_v32 }
 0x441   : > { %611 = vrot.lane.b32.xlu1 %v610_v35, %s1006_s23  ;;  %605 = vrot.lane.b32.xlu0 %v604_v36, %s1004_s21  ;;  %v622_v2 = vsel %vm367_vm3, %v620_v33, %v621_v34  ;;  %v616_v6 = vsel %vm360_vm2, %v614_v37, %v615_v5 }
 0x445   : > { %623 = vrot.lane.b32.xlu1 %v622_v2, %s1007_s24  ;;  %617 = vrot.lane.b32.xlu0 %v616_v6, %s1005_s22 }
 0x4b3   : > { %v612_v38 = vpop.permute.xlu1 %611  ;;  %v606_v39 = vpop.permute.xlu0 %605 }
 0x4b4   : > { %v626_v40 = vsel %vm374_vm6, %v598_v27, %v606_v39 }
 0x4b5   : > { %v627_v42 = vsel %vm376_vm7, %v626_v40, %v612_v38 }
 0x4b7   : > { %v624_v41 = vpop.permute.xlu1 %623  ;;  %v618_v43 = vpop.permute.xlu0 %617 }
 0x4b8   : > { %v628_v44 = vsel %vm378_vm8, %v627_v42, %v618_v43 }
 0x4b9   : > { %v629_v45 = vsel %vm380_vm9, %v628_v44, %v624_v41 }
 0x4ba   : > { %v630_v46 = vpack.c.bf16 %v629_v45, %v629_v45 }
 0x4bc   : > { %947 = vmatmul.mubr.msk.bf16.vlgmr.msra.gmra.mrb[4].mxu0 %vm410_vm10, %v630_v46 }
 0x58f   : > { %v698_v51 = vpop.f32.mrb[4].mxu0 }
 0x590   : > { %v699_v52 = vadd.f32 %v892_v49, %v698_v51  ;;  %v948_v53 = vpop.f32.mrb[5].mxu0 }
 0x591   : > { %v701_v54 = vpop.f32.mrb[6].mxu0 }
 0x592   : > { %vm704_vm15 = vcmp.gt.f32.partialorder %v699_v52, 0.0  ;;  %v705_v55 = vmul.f32 0.01, %v699_v52  ;;  %v949_v56 = vpop.f32.mrb[7].mxu0 }
 0x594   : > { %v706_v57 = vsel %vm704_vm15, %v699_v52, %v705_v55 }
 0x595   : > { %v708_v58 = vrot.slane %v706_v57, 7  ;;  %v710_v59 = vrot.slane %v706_v57, 6 }
 0x597   : > { %v712_v3 = vsel %vm465_vm12, %v706_v57, %v708_v58  ;;  %v713_v60 = vsel %vm465_vm12, %v708_v58, %v710_v59 }
 0x598   : > { %v722_v61 = vrot.slane %v712_v3, 2  ;;  %v723_v62 = vrot.slane %v713_v60, 2  ;;  %v716_v63 = vrot.slane %v712_v3, 1  ;;  %v717_v0 = vrot.slane %v713_v60, 1 }
 0x59a   : > { %v724_v1 = vsel %vm353_vm4, %v722_v61, %v723_v62  ;;  %v718_v4 = vsel %vm346_vm1, %v716_v63, %v717_v0 }
 0x59b   : > { %725 = vrot.lane.b32.xlu1 %v724_v1, %s1007_s24  ;;  %719 = vrot.lane.b32.xlu0 %v718_v4, %s1006_s23 }
 0x60d   : > { %v726_v7 = vpop.permute.xlu1 %725  ;;  %v720_v9 = vpop.permute.xlu0 %719 }
 0x60e   : > { %v728_v10 = vsel %vm376_vm7, %v712_v3, %v720_v9 }
 0x60f   : > { %v729_v11 = vsel %vm380_vm9, %v728_v10, %v726_v7 }
 0x610   : > { %v730_v12 = vpack.c.bf16 %v729_v11, %v729_v11 }
 0x612   : > { %957 = vmatmul.mubr.msk.bf16.vlgmr.msra.gmra.mrb[4].mxu1 %vm516_vm13, %v730_v12 }
 0x6e5   : > { %v799_v14 = vpop.f32.mrb[4].mxu1 }
 0x6e6   : > { %v800_v15 = vadd.f32 %v897_v13, %v799_v14  ;;  %v958_v16 = vpop.f32.mrb[5].mxu1 }
 0x6e7   : > { %v802_v17 = vpop.f32.mrb[6].mxu1 }
 0x6e8   : > { %992 = vtanh.f32 %v800_v15  ;;  %v959_v8 = vpop.f32.mrb[7].mxu1 }
 0x6f2   : > { %v993_v19 = vpop.eup %992 }
 0x6f3   : > { %v806_v20 = vadd.f32 %v993_v19, %v1164_v18  ;;  %808 = vrot.lane.b32.xlu0 %v993_v19, %s1008_s17 }
 0x6f5   : > { %812 = vst.msk [vmem:[#allocation2] sm:$0xff] %vm576_vm14, %v806_v20 }
 0x765   : > { %v809_v22 = vpop.permute.xlu0 %808 }
 0x766   : > { %v811_v23 = vsub.f32 %v1176_v21, %v809_v22 }
 0x768   : > { %813 = vst.msk [vmem:[#allocation2 + $0x8] sm:$0xff] %vm576_vm14, %v811_v23 }
 0x76f   : > { %v815_v24 = vld [vmem:[#allocation2 + $0x1] ss:$2 sm:$0xff]  ;;  %v814_v26 = vld [vmem:[#allocation2] ss:$2 sm:$0xff] }
 0x770   : > { %817 = vrot.lane.b32.xlu1 %v815_v24, %s1009_s18 }
 0x7e2   : > { %v818_v25 = vpop.permute.xlu1 %817 }
 0x7e3   : > { %v820_v18 = vsel %vm576_vm14, %v814_v26, %v818_v25 }
 0x7e4   : > { %821 = vst.msk [vmem:[%s327_s25] sm:$0xff] %vm374_vm6, %v820_v18 }
 0x7e5 PF: > { %s19_s30 = sadd.s32 1, %s1000_s30  }
 0x7e6   : > { %p16_p4 = scmp.ge.s32.totalorder %s19_s30, 4  }
 0x7e8   :  { %18 = sbr.rel (!%p16_p4) target bundleno = 1 (0x1), region = 87 }

</bundles_post_ra>
